<compile_context>
chip_gen: v5e
topology: v5e:2x2
jax: 0.10.0
libtpu: 0.0.40
codegen_flags: <defaults>
</compile_context>

<pallas_src>
import functools

import numpy as np
import jax
import jax.numpy as jnp
from jax.experimental import pallas as pl
from jax.experimental.pallas import tpu as pltpu


# ----------------------------------------------------------------------------
# helpers
# ----------------------------------------------------------------------------
def autopad(k, p=None, d=1):
    """Pad to 'same' shape outputs (mirror of the PyTorch helper)."""
    if d > 1:
        k = d * (k - 1) + 1 if isinstance(k, int) else [d * (x - 1) + 1 for x in k]
    if p is None:
        p = k // 2 if isinstance(k, int) else [x // 2 for x in k]
    return p


def _round_up(x, m):
    return (x + m - 1) // m * m


def _mm_tile(dim, candidates):
    """(tile, padded_dim): full block if small, else largest dividing candidate,
    else pad to a multiple of the smallest candidate."""
    if dim <= candidates[-1]:
        return dim, dim
    for t in candidates:
        if dim % t == 0:
            return t, dim
    t = candidates[-1]
    return t, _round_up(dim, t)


def _cout_tile(n):
    """Output-channel tile: lane-dense 128/256 when divisible, full block otherwise."""
    if n % 128 != 0 or n <= 256:
        return n
    return 256 if n % 256 == 0 else 128


def _row_tile(oh, ow, target_rows=256):
    """Largest divisor of OH keeping the per-tile matmul M around target_rows."""
    if oh * ow <= 2 * target_rows:
        return oh
    t = max(1, min(oh, target_rows // max(ow, 1)))
    while oh % t:
        t -= 1
    return t


# ----------------------------------------------------------------------------
# Pallas kernels
# ----------------------------------------------------------------------------
def _mm_kernel(x_ref, w_ref, b_ref, o_ref, acc_ref, *, act):
    """Tiled matmul (bf16 MXU operands, f32 VMEM accumulator) + bias + SiLU."""
    @pl.when(pl.program_id(2) == 0)
    def _init():
        acc_ref[...] = jnp.zeros_like(acc_ref)

    acc_ref[...] += jnp.dot(x_ref[...], w_ref[...],
                            preferred_element_type=jnp.float32)

    @pl.when(pl.program_id(2) == pl.num_programs(2) - 1)
    def _fin():
        r = acc_ref[...] + b_ref[...]
        if act:
            r = r * jax.nn.sigmoid(r)          # SiLU, math stays f32
        o_ref[...] = r.astype(o_ref.dtype)


def _conv_kxk_kernel(t_ref, w_ref, b_ref, o_ref, *, k, s, ow, act):
    """k x k stride-s conv tile from tap-decomposed input.

    t_ref: (1, k*s, TOH, PW, C) bf16 with t[dy*s+px, i, j, c] = x_pad[s*i+dy, s*j+px, c]
    w_ref: (k*k*C, TN) bf16 (BN-folded), b_ref: (1, TN) f32, o_ref: (1, TOH, OW, TN).
    Builds an in-VMEM im2col patch and issues ONE matmul with K = k*k*C.
    """
    toh = o_ref.shape[1]
    c = t_ref.shape[-1]
    cols = []
    for dy in range(k):
        for dx in range(k):
            # slice the Ref directly (static windows), no whole-block load + re-slice
            cols.append(t_ref[0, dy * s + (dx % s), :, (dx // s):(dx // s) + ow, :])
    patch = jnp.concatenate(cols, axis=-1).reshape(toh * ow, k * k * c)   # bf16
    acc = jnp.dot(patch, w_ref[...], preferred_element_type=jnp.float32)  # (M, TN)
    r = acc + b_ref[...]
    if act:
        r = r * jax.nn.sigmoid(r)
    o_ref[0] = r.reshape(toh, ow, -1).astype(o_ref.dtype)


# ----------------------------------------------------------------------------
# Pallas wrappers
# ----------------------------------------------------------------------------
def pallas_matmul_bias_act(x, w, b, *, act=True, out_dtype=jnp.float32):
    """act(x @ w + b).  x: (M, K) (cast bf16), w: (K, N) bf16, b: (N,) f32."""
    M, K = x.shape
    Kw, N = w.shape
    assert K == Kw
    tm, Mp = _mm_tile(M, (512, 256, 128))
    tk, Kp = _mm_tile(K, (512, 256, 128))
    tn, Np = _mm_tile(N, (256, 128))

    xb = x.astype(jnp.bfloat16)
    if (Mp, Kp) != (M, K):                     # pad only the dims that need it
        xb = jnp.pad(xb, ((0, Mp - M), (0, Kp - K)))
    wb = w.astype(jnp.bfloat16)
    if (Kp, Np) != (K, N):
        wb = jnp.pad(wb, ((0, Kp - K), (0, Np - N)))
    bb = b.astype(jnp.float32).reshape(1, N)
    if Np != N:
        bb = jnp.pad(bb, ((0, 0), (0, Np - N)))

    grid = (Mp // tm, Np // tn, Kp // tk)
    out = pl.pallas_call(
        functools.partial(_mm_kernel, act=act),
        out_shape=jax.ShapeDtypeStruct((Mp, Np), out_dtype),
        grid=grid,
        in_specs=[
            pl.BlockSpec((tm, tk), lambda i, j, kk: (i, kk)),
            pl.BlockSpec((tk, tn), lambda i, j, kk: (kk, j)),
            pl.BlockSpec((1, tn), lambda i, j, kk: (0, j)),
        ],
        out_specs=pl.BlockSpec((tm, tn), lambda i, j, kk: (i, j)),
        scratch_shapes=[pltpu.VMEM((tm, tn), jnp.float32)],
        compiler_params=pltpu.CompilerParams(
            dimension_semantics=("parallel", "parallel", "arbitrary"),
            vmem_limit_bytes=32 * 1024 * 1024),
        cost_estimate=pl.CostEstimate(
            flops=2 * M * N * K,
            transcendentals=M * N if act else 0,
            bytes_accessed=xb.size * 2 + wb.size * 2
            + Mp * Np * np.dtype(out_dtype).itemsize),
    )(xb, wb, bb)
    if (Mp, Np) != (M, N):
        out = out[:M, :N]
    return out


def pallas_conv_kxk(x, w_mm, b, *, k, s, pad, act, out_dtype=jnp.float32):
    """k x k stride-s pad-p conv + folded-BN bias + SiLU.  x: (B,H,W,C) bf16."""
    B, H, W, C = x.shape
    cout = w_mm.shape[-1]
    OH = (H + 2 * pad - k) // s + 1
    OW = (W + 2 * pad - k) // s + 1

    # Tap decomposition (built once, ~k/s x the padded input in HBM):
    #   taps[b, dy*s + px, i, j, c] == x_pad[b, s*i + dy, s*j + px, c]
    # so output-row tiles never overlap in the BlockSpec (no halo DMA needed).
    PW = max(OW + (k - 1) // s, -(-(W + 2 * pad) // s))
    Wpp = s * PW
    xp = jnp.pad(x, ((0, 0), (pad, pad), (pad, Wpp - W - pad), (0, 0)))
    rows = jnp.stack(
        [xp[:, dy:dy + s * (OH - 1) + 1:s, :, :] for dy in range(k)], axis=1)
    taps = rows.reshape(B, k, OH, PW, s, C)
    taps = jnp.transpose(taps, (0, 1, 4, 2, 3, 5)).reshape(B, k * s, OH, PW, C)

    toh = _row_tile(OH, OW)                    # spatial tiling -> small accumulators
    tn = _cout_tile(cout)
    grid = (B, OH // toh, cout // tn)

    out = pl.pallas_call(
        functools.partial(_conv_kxk_kernel, k=k, s=s, ow=OW, act=act),
        out_shape=jax.ShapeDtypeStruct((B, OH, OW, cout), out_dtype),
        grid=grid,
        in_specs=[
            pl.BlockSpec((1, k * s, toh, PW, C), lambda bb, i, j: (bb, 0, i, 0, 0)),
            pl.BlockSpec((k * k * C, tn), lambda bb, i, j: (0, j)),
            pl.BlockSpec((1, tn), lambda bb, i, j: (0, j)),
        ],
        out_specs=pl.BlockSpec((1, toh, OW, tn), lambda bb, i, j: (bb, i, 0, j)),
        compiler_params=pltpu.CompilerParams(
            dimension_semantics=("parallel", "parallel", "parallel"),
            vmem_limit_bytes=32 * 1024 * 1024),
        cost_estimate=pl.CostEstimate(
            flops=2 * B * OH * OW * k * k * C * cout,
            transcendentals=B * OH * OW * cout if act else 0,
            bytes_accessed=taps.size * 2 + w_mm.size * 2
            + B * OH * OW * cout * np.dtype(out_dtype).itemsize),
    )(taps, w_mm, b.reshape(1, cout))
    return out


# ----------------------------------------------------------------------------
# Conv module: params + forward
# ----------------------------------------------------------------------------
def init_conv_params(key, c1, c2, k=1, s=1, p=None, g=1, d=1, act=True):
    """Conv2d(c1,c2,k,s,autopad,bias=False) + BatchNorm2d(c2) + SiLU, eval mode."""
    # TODO(synk): groups > 1 and dilation > 1 are not used by AgentNet's Conv and
    # are not implemented in this Pallas path.
    assert g == 1 and d == 1
    pad = autopad(k, p, d)
    fan_in = c1 * k * k
    w = jax.random.normal(key, (k, k, c1, c2), jnp.float32) / np.sqrt(fan_in)
    # BN (eval, fresh stats): gamma=1, beta=0, mean=0, var=1, eps=1e-5 -> fold once.
    eps = 1e-5
    gamma = jnp.ones((c2,), jnp.float32)
    beta = jnp.zeros((c2,), jnp.float32)
    mean = jnp.zeros((c2,), jnp.float32)
    var = jnp.ones((c2,), jnp.float32)
    scale = gamma / jnp.sqrt(var + eps)
    w_f = (w * scale).astype(jnp.bfloat16)                 # folded, bf16, once
    b_f = (beta - mean * scale).astype(jnp.float32)
    return {
        "k": k, "s": s, "p": pad, "act": bool(act),
        "w_hwio": w_f,                                     # (k,k,c1,c2) for reference
        "w_mm": w_f.reshape(k * k * c1, c2),               # MXU layout, K = k*k*c1
        "b": b_f,                                          # (c2,) f32
    }


def conv_forward(params, x_nchw, out_dtype=jnp.float32):
    """Conv + folded BN + SiLU.  NCHW in, NCHW out (matches the PyTorch module)."""
    k, s, pad, act = params["k"], params["s"], params["p"], params["act"]
    x = jnp.transpose(x_nchw, (0, 2, 3, 1)).astype(jnp.bfloat16)   # NHWC, bf16 I/O
    B, H, W, C = x.shape
    OH = (H + 2 * pad - k) // s + 1
    OW = (W + 2 * pad - k) // s + 1
    if k == 1:
        if pad:
            x = jnp.pad(x, ((0, 0), (pad, pad), (pad, pad), (0, 0)))
        if s > 1 or pad:
            x = x[:, 0:s * (OH - 1) + 1:s, 0:s * (OW - 1) + 1:s, :]
        y = pallas_matmul_bias_act(x.reshape(B * OH * OW, C), params["w_mm"],
                                   params["b"], act=act, out_dtype=out_dtype)
        y = y.reshape(B, OH, OW, -1)
    else:
        y = pallas_conv_kxk(x, params["w_mm"], params["b"], k=k, s=s, pad=pad,
                            act=act, out_dtype=out_dtype)
    return jnp.transpose(y, (0, 3, 1, 2))


def conv_reference(params, x_nchw):
    """Pure-JAX reference (same bf16-rounded operands, f32 HIGHEST-precision conv)."""
    s, pad, act = params["s"], params["p"], params["act"]
    x = jnp.transpose(x_nchw, (0, 2, 3, 1)).astype(jnp.bfloat16).astype(jnp.float32)
    w = params["w_hwio"].astype(jnp.float32)
    y = jax.lax.conv_general_dilated(
        x, w, window_strides=(s, s), padding=[(pad, pad), (pad, pad)],
        dimension_numbers=("NHWC", "HWIO", "NHWC"),
        precision=jax.lax.Precision.HIGHEST)
    y = y + params["b"].reshape(1, 1, 1, -1)
    if act:
        y = y * jax.nn.sigmoid(y)
    return jnp.transpose(y, (0, 3, 1, 2))


# ----------------------------------------------------------------------------
if __name__ == "__main__":
    root = jax.random.PRNGKey(0)
    kx, k3, k1 = jax.random.split(root, 3)
    x = jax.random.normal(kx, (2, 4, 16, 16), jnp.float32)

    # The two Conv configurations used by AgentNet: 3x3 stride-2 (downsample)
    # and the default 1x1 stride-1 (pointwise).
    p3 = init_conv_params(k3, 4, 32, k=3, s=2)
    p1 = init_conv_params(k1, 4, 16, k=1, s=1)

    fwd3 = jax.jit(lambda xx: conv_forward(p3, xx))
    fwd1 = jax.jit(lambda xx: conv_forward(p1, xx))

    y3 = jax.block_until_ready(fwd3(x))
    y1 = jax.block_until_ready(fwd1(x))

    assert y3.shape == (2, 32, 8, 8), y3.shape
    assert y1.shape == (2, 16, 16, 16), y1.shape
    assert bool(jnp.all(jnp.isfinite(y3))) and bool(jnp.all(jnp.isfinite(y1)))

    r3 = conv_reference(p3, x)
    r1 = conv_reference(p1, x)
    np.testing.assert_allclose(np.asarray(y3), np.asarray(r3), atol=5e-3, rtol=5e-3)
    np.testing.assert_allclose(np.asarray(y1), np.asarray(r1), atol=5e-3, rtol=5e-3)

    print("KERNEL_OK")
</pallas_src>

<mosaic_0001>
module attributes {stable_mosaic.version = 11 : i64} {
  func.func @_conv_kxk_kernel(%arg0: i32, %arg1: i32, %arg2: i32, %arg3: memref<1x6x8x9x4xbf16, #tpu.memory_space<vmem>>, %arg4: memref<36x32xbf16, #tpu.memory_space<vmem>>, %arg5: memref<1x32xf32, #tpu.memory_space<vmem>>, %arg6: memref<1x8x8x32xf32, #tpu.memory_space<vmem>>) attributes {dimension_semantics = [#tpu.dimension_semantics<parallel>, #tpu.dimension_semantics<parallel>, #tpu.dimension_semantics<parallel>], iteration_bounds = array<i64: 2, 1, 1>, scalar_prefetch = 0 : i64, scratch_operands = 0 : i64, tpu.core_type = #tpu.core_type<tc>, window_params = [{transform_indices = @transform_0, window_bounds = array<i64: 1, 6, 8, 9, 4>}, {transform_indices = @transform_1, window_bounds = array<i64: 36, 32>}, {transform_indices = @transform_2, window_bounds = array<i64: 1, 32>}, {transform_indices = @transform_3, window_bounds = array<i64: 1, 8, 8, 32>}]} {
    %c0 = arith.constant 0 : index
    %c0_0 = arith.constant 0 : index
    %c0_1 = arith.constant 0 : index
    %c0_2 = arith.constant 0 : index
    %c0_3 = arith.constant 0 : index
    %0 = vector.load %arg3[%c0, %c0_0, %c0_1, %c0_2, %c0_3] : memref<1x6x8x9x4xbf16, #tpu.memory_space<vmem>>, vector<1x1x8x8x4xbf16>
    %1 = vector.shape_cast %0 : vector<1x1x8x8x4xbf16> to vector<8x8x4xbf16>
    %c0_4 = arith.constant 0 : index
    %c1 = arith.constant 1 : index
    %c0_5 = arith.constant 0 : index
    %c0_6 = arith.constant 0 : index
    %c0_7 = arith.constant 0 : index
    %2 = vector.load %arg3[%c0_4, %c1, %c0_5, %c0_6, %c0_7] : memref<1x6x8x9x4xbf16, #tpu.memory_space<vmem>>, vector<1x1x8x8x4xbf16>
    %3 = vector.shape_cast %2 : vector<1x1x8x8x4xbf16> to vector<8x8x4xbf16>
    %c0_8 = arith.constant 0 : index
    %c0_9 = arith.constant 0 : index
    %c0_10 = arith.constant 0 : index
    %c1_11 = arith.constant 1 : index
    %c0_12 = arith.constant 0 : index
    %4 = vector.load %arg3[%c0_8, %c0_9, %c0_10, %c1_11, %c0_12] : memref<1x6x8x9x4xbf16, #tpu.memory_space<vmem>>, vector<1x1x8x8x4xbf16>
    %5 = vector.shape_cast %4 : vector<1x1x8x8x4xbf16> to vector<8x8x4xbf16>
    %c0_13 = arith.constant 0 : index
    %c2 = arith.constant 2 : index
    %c0_14 = arith.constant 0 : index
    %c0_15 = arith.constant 0 : index
    %c0_16 = arith.constant 0 : index
    %6 = vector.load %arg3[%c0_13, %c2, %c0_14, %c0_15, %c0_16] : memref<1x6x8x9x4xbf16, #tpu.memory_space<vmem>>, vector<1x1x8x8x4xbf16>
    %7 = vector.shape_cast %6 : vector<1x1x8x8x4xbf16> to vector<8x8x4xbf16>
    %c0_17 = arith.constant 0 : index
    %c3 = arith.constant 3 : index
    %c0_18 = arith.constant 0 : index
    %c0_19 = arith.constant 0 : index
    %c0_20 = arith.constant 0 : index
    %8 = vector.load %arg3[%c0_17, %c3, %c0_18, %c0_19, %c0_20] : memref<1x6x8x9x4xbf16, #tpu.memory_space<vmem>>, vector<1x1x8x8x4xbf16>
    %9 = vector.shape_cast %8 : vector<1x1x8x8x4xbf16> to vector<8x8x4xbf16>
    %c0_21 = arith.constant 0 : index
    %c2_22 = arith.constant 2 : index
    %c0_23 = arith.constant 0 : index
    %c1_24 = arith.constant 1 : index
    %c0_25 = arith.constant 0 : index
    %10 = vector.load %arg3[%c0_21, %c2_22, %c0_23, %c1_24, %c0_25] : memref<1x6x8x9x4xbf16, #tpu.memory_space<vmem>>, vector<1x1x8x8x4xbf16>
    %11 = vector.shape_cast %10 : vector<1x1x8x8x4xbf16> to vector<8x8x4xbf16>
    %c0_26 = arith.constant 0 : index
    %c4 = arith.constant 4 : index
    %c0_27 = arith.constant 0 : index
    %c0_28 = arith.constant 0 : index
    %c0_29 = arith.constant 0 : index
    %12 = vector.load %arg3[%c0_26, %c4, %c0_27, %c0_28, %c0_29] : memref<1x6x8x9x4xbf16, #tpu.memory_space<vmem>>, vector<1x1x8x8x4xbf16>
    %13 = vector.shape_cast %12 : vector<1x1x8x8x4xbf16> to vector<8x8x4xbf16>
    %c0_30 = arith.constant 0 : index
    %c5 = arith.constant 5 : index
    %c0_31 = arith.constant 0 : index
    %c0_32 = arith.constant 0 : index
    %c0_33 = arith.constant 0 : index
    %14 = vector.load %arg3[%c0_30, %c5, %c0_31, %c0_32, %c0_33] : memref<1x6x8x9x4xbf16, #tpu.memory_space<vmem>>, vector<1x1x8x8x4xbf16>
    %15 = vector.shape_cast %14 : vector<1x1x8x8x4xbf16> to vector<8x8x4xbf16>
    %c0_34 = arith.constant 0 : index
    %c4_35 = arith.constant 4 : index
    %c0_36 = arith.constant 0 : index
    %c1_37 = arith.constant 1 : index
    %c0_38 = arith.constant 0 : index
    %16 = vector.load %arg3[%c0_34, %c4_35, %c0_36, %c1_37, %c0_38] : memref<1x6x8x9x4xbf16, #tpu.memory_space<vmem>>, vector<1x1x8x8x4xbf16>
    %17 = vector.shape_cast %16 : vector<1x1x8x8x4xbf16> to vector<8x8x4xbf16>
    %18 = tpu.concatenate %1, %3, %5, %7, %9, %11, %13, %15, %17 in 2 : vector<8x8x4xbf16>, vector<8x8x4xbf16>, vector<8x8x4xbf16>, vector<8x8x4xbf16>, vector<8x8x4xbf16>, vector<8x8x4xbf16>, vector<8x8x4xbf16>, vector<8x8x4xbf16>, vector<8x8x4xbf16> -> vector<8x8x36xbf16>
    %19 = vector.shape_cast %18 : vector<8x8x36xbf16> to vector<64x36xbf16>
    %c0_39 = arith.constant 0 : index
    %c0_40 = arith.constant 0 : index
    %20 = vector.load %arg4[%c0_39, %c0_40] : memref<36x32xbf16, #tpu.memory_space<vmem>>, vector<36x32xbf16>
    %cst = arith.constant dense<0.000000e+00> : vector<64x32xf32>
    %21 = tpu.matmul %19, %20, %cst {dimension_numbers = #tpu.dot_dimension_numbers<[1], [0], [0], [1], [0, 0, 1, 1], [], []>} : vector<64x36xbf16>, vector<36x32xbf16>, vector<64x32xf32> -> vector<64x32xf32>
    %c0_41 = arith.constant 0 : index
    %c0_42 = arith.constant 0 : index
    %22 = vector.load %arg5[%c0_41, %c0_42] : memref<1x32xf32, #tpu.memory_space<vmem>>, vector<1x32xf32>
    %23 = vector.broadcast %22 : vector<1x32xf32> to vector<64x32xf32>
    %24 = arith.addf %21, %23 : vector<64x32xf32>
    %25 = arith.negf %24 : vector<64x32xf32>
    %26 = math.exp %25 : vector<64x32xf32>
    %cst_43 = arith.constant 1.000000e+00 : f32
    %27 = vector.broadcast %cst_43 : f32 to vector<64x32xf32>
    %28 = arith.addf %27, %26 : vector<64x32xf32>
    %29 = arith.divf %27, %28 : vector<64x32xf32>
    %30 = arith.mulf %24, %29 : vector<64x32xf32>
    %31 = vector.shape_cast %30 : vector<64x32xf32> to vector<8x8x32xf32>
    %c0_44 = arith.constant 0 : index
    %c0_45 = arith.constant 0 : index
    %c0_46 = arith.constant 0 : index
    %c0_47 = arith.constant 0 : index
    %32 = vector.load %arg6[%c0_44, %c0_45, %c0_46, %c0_47] : memref<1x8x8x32xf32, #tpu.memory_space<vmem>>, vector<1x8x8x32xf32>
    %33 = vector.shape_cast %32 : vector<1x8x8x32xf32> to vector<8x8x32xf32>
    %34 = vector.shape_cast %31 : vector<8x8x32xf32> to vector<1x8x8x32xf32>
    tpu.vector_store %arg6[%c0_44, %c0_45, %c0_46, %c0_47], %34 {strides = array<i32>} : memref<1x8x8x32xf32, #tpu.memory_space<vmem>>, vector<1x8x8x32xf32>,
    return
  }
  func.func @transform_0(%arg0: i32, %arg1: i32, %arg2: i32) -> (i32, i32, i32, i32, i32) {
    %c0_i32 = arith.constant 0 : i32
    %c0_i32_0 = arith.constant 0 : i32
    %c0_i32_1 = arith.constant 0 : i32
    %c0_i32_2 = arith.constant 0 : i32
    return %arg0, %c0_i32, %arg1, %c0_i32_0, %c0_i32_1 : i32, i32, i32, i32, i32
  }
  func.func @transform_1(%arg0: i32, %arg1: i32, %arg2: i32) -> (i32, i32) {
    %c0_i32 = arith.constant 0 : i32
    %c0_i32_0 = arith.constant 0 : i32
    return %c0_i32, %arg2 : i32, i32
  }
  func.func @transform_2(%arg0: i32, %arg1: i32, %arg2: i32) -> (i32, i32) {
    %c0_i32 = arith.constant 0 : i32
    %c0_i32_0 = arith.constant 0 : i32
    return %c0_i32, %arg2 : i32, i32
  }
  func.func @transform_3(%arg0: i32, %arg1: i32, %arg2: i32) -> (i32, i32, i32, i32) {
    %c0_i32 = arith.constant 0 : i32
    %c0_i32_0 = arith.constant 0 : i32
    return %arg0, %arg1, %c0_i32, %arg2 : i32, i32, i32, i32
  }
}

</mosaic_0001>

<bundles_post_ra>
// kernel: _lambda_.1
= control target key start
LH: loop header
LB: loop body
LE: loop exit
PB: predicated region body
PF: predicated region fallthrough
CT: control target
= control target key end

     0   :  { %8 = vsyncpa [#allocation3], 0  ;;  %s2171_s0 = inlined_call_operand.vmem [shape: bf16[2,6,8,9,4], index: 0, kind: input, shape index: {}]   ;;  %s2172_s1 = inlined_call_operand.vmem [shape: bf16[36,32], index: 1, kind: input, shape index: {}]   ;;  %s2173_s2 = inlined_call_operand.vmem [shape: f32[1,32], index: 2, kind: input, shape index: {}]   ;;  %s2174_s3 = inlined_call_operand.hbm [shape: f32[2,8,8,32], index: 3, kind: output, shape index: {}]  }
   0x1   :  { %10 = vsyncpa [#allocation3 + $0x1], 0  ;;  %s1708_s12 = smov 0   ;;  %s1710_s13 = smov 0  }
   0x2   :  { %s1712_s14 = smov 0   ;;  %s1714_s15 = smov 0  }
   0x3   :  { %s1716_s16 = smov 0   ;;  %s1718_s17 = smov 0  }
   0x4 LB: > { %s1359_s18 = sadd.s32 4294967295, %s1677_s17   ;;  %s1360_s19 = sadd.s32 4294967294, %s1677_s17   ;;  %s1677_s17 = sphi %s1718_s17, %s16_s17   ;;  %s1673_s16 = sphi %s1716_s16, %s2181_s16   ;;  %s1669_s15 = sphi %s1714_s15, %s2180_s15   ;;  %s1665_s14 = sphi %s1712_s14, %s2179_s14   ;;  %s1661_s13 = sphi %s1710_s13, %s2178_s13   ;;  %s1657_s12 = sphi %s1708_s12, %s2177_s12  }
   0x5   : > { %s35_s20 = sadd.s32 1, %s1673_s16  ;;  %s126_s21 = sadd.s32 1, %s1665_s14 }
   0x6   : > { %p37_p0 = scmp.ge.s32.totalorder %s35_s20, 2  ;;  %p136_p1 = scmp.ne.s32.totalorder %s1665_s14, %s1661_s13 }
   0x7   : > { %p137_p2 = scmp.eq.s32.totalorder %s1359_s18, 1  ;;  %p142_p3 = scmp.ne.s32.totalorder %s1661_s13, %s1657_s12 }
   0x8   : > { %s2183_s20 = smov (%p37_p0, %s35_s20), 0  ;;  %p143_p5 = scmp.eq.s32.totalorder %s1360_s19, 1 }
   0x9   : > { %p1748_p4 = por %p137_p2, %p136_p1  ;;  %s119_s23 = ssub.s32 %s1673_s16, %s2183_s20 }
   0xa   : > { %p1365_p6 = scmp.ge.s32.totalorder %s1677_s17, 1  ;;  %p124_p7 = scmp.eq.s32.totalorder %s119_s23, 0 }
   0xb   : > { %p1755_p8 = por %p143_p5, %p142_p3  ;;  %p188_p9 = scmp.lt.s32.totalorder %s1677_s17, 3 }
   0xc   : > { %s1761_s25 = scalar_select %p124_p7, %s1665_s14, %s126_s21  }
   0xd   : > { %p189_p10 = pnand %p1365_p6, %p188_p9 }
   0xe   : > { %p225_p11 = scmp.lt.s32.totalorder (!%p189_p10), %s1669_s15, 1  ;;  %s1679_s4 = smov (!%p189_p10), 4  }
   0xf   : > { %192 = sbr.rel (%p189_p10) target bundleno = 488 (0x1e8), region = 32  ;;  %s1680_s5 = smov (!%p189_p10), 12  }
  0x10   : > { %s1681_s6 = smov (!%p189_p10), 8   ;;  %s1682_s7 = smov (!%p189_p10), 16  }
  0x11   : > { %s1683_s8 = smov (!%p189_p10), 20   ;;  %s1684_s9 = smov (!%p189_p10), 24  }
  0x12   : > { %s1685_s10 = smov (!%p189_p10), 28   ;;  %s1686_s11 = smov (!%p189_p10), 32  }
  0x14   : > { %s226_s26 = scalar_select %p225_p11, %s1669_s15, 1  ;;  %vm825_vm0 = vcmask 31744   ;;  %vm850_vm1 = vcmask 64512   ;;  %vm867_vm2 = vcmask 97280   ;;  %vm1026_vm3 = vcmask 1041408  }
  0x15   : > { %vm884_vm4 = vcmask 130048   ;;  %vm901_vm5 = vcmask 162816   ;;  %vm918_vm6 = vcmask 195584   ;;  %vm935_vm7 = vcmask 228352  }
  0x16   : > { %s1501_s27 = smul.u32 384, %s226_s26  ;;  %vm952_vm8 = vcmask 261120   ;;  %vm1013_vm9 = vcmask 293888  }
  0x18   : > { %s1768_s30 = scalar_lea.vmem %s2171_s0, %s1501_s27  ;;  %s1619_s27 = scalar_lea.hbm %s2174_s3, 128 }
  0x19   : > { %v1374_v0 = vld [vmem:[%s1768_s30 + $0x70] sm:$0xf]  ;;  %v1372_v1 = vld [vmem:[%s1768_s30 + $0x60] sm:$0xf]  ;;  %v1375_v4 = vld [vmem:[%s1768_s30 + $0x78] sm:$0xf] }
  0x1a   : > { %v335_v2 = vunpack.c.l.b16 %v1374_v0  ;;  %v333_v3 = vunpack.c.l.b16 %v1372_v1  ;;  %v1373_v5 = vld [vmem:[%s1768_s30 + $0x68] sm:$0xf]  ;;  %v1380_v6 = vld [vmem:[%s1768_s30 + $0xa0] sm:$0xf]  ;;  %v1454_v8 = vld [vmem:[%s1768_s30 + $0x38] sm:$0xf]  ;;  %v336_v16 = vunpack.c.l.b16 %v1375_v4 }
  0x1b   : > { %v1775_v7 = vunpack.c.l.b16 %v1380_v6  ;;  %v1488_v9 = vld [vmem:[%s1768_s30 + $0x38] sm:$0x10]  ;;  %v1450_v10 = vld [vmem:[%s1768_s30 + $0x30] sm:$0xf]  ;;  %v1487_v13 = vld [vmem:[%s1768_s30 + $0x30] sm:$0x10]  ;;  %v334_v19 = vunpack.c.l.b16 %v1373_v5 }
  0x1c   : > { %v343_v11 = vpack.c.b16 %v335_v2, %v335_v2  ;;  %v341_v12 = vpack.c.b16 %v333_v3, %v333_v3  ;;  %v1442_v14 = vld [vmem:[%s1768_s30 + $0x20] sm:$0xf]  ;;  %v1485_v15 = vld [vmem:[%s1768_s30 + $0x20] sm:$0x10]  ;;  %v1446_v18 = vld [vmem:[%s1768_s30 + $0x28] sm:$0xf]  ;;  %v1455_v20 = vor.u32 %v1488_v9, %v1454_v8  ;;  %v1451_v21 = vor.u32 %v1487_v13, %v1450_v10 }
  0x1d   : > { %v493_v17 = vpack.c.b16 %v1775_v7, %v1775_v7  ;;  %v1443_v22 = vor.u32 %v1485_v15, %v1442_v14  ;;  %v1486_v23 = vld [vmem:[%s1768_s30 + $0x28] sm:$0x10]  ;;  %v344_v27 = vpack.c.b16 %v336_v16, %v336_v16  ;;  %v342_v28 = vpack.c.b16 %v334_v19, %v334_v19  ;;  %v1382_v42 = vld [vmem:[%s1768_s30 + $0xb0] sm:$0xf]  ;;  %v1381_v43 = vld [vmem:[%s1768_s30 + $0xa8] sm:$0xf] }
  0x1e   : > { %357 = vrot.lane.b32.xlu1 %v343_v11, %s1679_s4  ;;  %353 = vrot.lane.b32.xlu0 %v341_v12, %s1679_s4  ;;  %v1447_v24 = vor.u32 %v1486_v23, %v1446_v18  ;;  %v453_v29 = vshll.u32 %v1455_v20, 16  ;;  %v446_v30 = vshll.u32 %v1451_v21, 16  ;;  %v451_v34 = vshrl.u32 %v1455_v20, 16  ;;  %v1383_v45 = vld [vmem:[%s1768_s30 + $0xb8] sm:$0xf] }
  0x1f   : > { %505 = vrot.lane.b32.xlu2 %v493_v17, %s1680_s5  ;;  %v430_v25 = vshrl.u32 %v1443_v22, 16  ;;  %v432_v26 = vshll.u32 %v1443_v22, 16  ;;  %v444_v36 = vshrl.u32 %v1451_v21, 16  ;;  %v487_v46 = vunpack.c.l.b16 %v1382_v42  ;;  %v1396_v48 = vld [vmem:[%s1768_s30 + $0xa4] sm:$0x1] }
  0x20   : > { %v439_v32 = vshll.u32 %v1447_v24, 16  ;;  %v455_v35 = vrot.slane %v453_v29, 1  ;;  %v448_v37 = vrot.slane %v446_v30, 1  ;;  %v437_v38 = vshrl.u32 %v1447_v24, 16  ;;  %v1397_v50 = vld [vmem:[%s1768_s30 + $0xac] sm:$0x1] }
  0x21   : > { %v434_v31 = vrot.slane %v432_v26, 1  ;;  %v486_v47 = vunpack.c.l.b16 %v1381_v43  ;;  %v488_v49 = vunpack.c.l.b16 %v1383_v45  ;;  %v565_v51 = vunpack.c.l.b16 %v1396_v48  ;;  %v1389_v54 = vld [vmem:[%s1768_s30 + $0xe8] sm:$0xf]  ;;  %v1388_v55 = vld [vmem:[%s1768_s30 + $0xe0] sm:$0xf] }
  0x22   : > { %v441_v39 = vrot.slane %v439_v32, 1  ;;  %v456_v40 = vor.u32 %v455_v35, %v451_v34  ;;  %v449_v41 = vor.u32 %v448_v37, %v444_v36  ;;  %v495_v52 = vpack.c.b16 %v487_v46, %v487_v46  ;;  %v1390_v58 = vld [vmem:[%s1768_s30 + $0xf0] sm:$0xf]  ;;  %v1399_v63 = vld [vmem:[%s1768_s30 + $0xbc] sm:$0x1] }
  0x23   : > { %v435_v33 = vor.u32 %v434_v31, %v430_v25  ;;  %v494_v53 = vpack.c.b16 %v486_v47, %v486_v47  ;;  %v496_v56 = vpack.c.b16 %v488_v49, %v488_v49  ;;  %v566_v57 = vunpack.c.l.b16 %v1397_v50  ;;  %v1398_v0 = vld [vmem:[%s1768_s30 + $0xb4] sm:$0x1]  ;;  %v1391_v8 = vld [vmem:[%s1768_s30 + $0xf8] sm:$0xf]  ;;  %v1404_v22 = vld [vmem:[%s1768_s30 + $0x120] sm:$0xf] }
  0x24   : > { %v442_v44 = vor.u32 %v441_v39, %v437_v38  ;;  %v526_v59 = vunpack.c.l.b16 %v1389_v54  ;;  %v573_v60 = vpack.c.b16 %v565_v51, %v1775_v7  ;;  %v525_v61 = vunpack.c.l.b16 %v1388_v55  ;;  %v1406_v30 = vld [vmem:[%s1768_s30 + $0x130] sm:$0xf]  ;;  %v1405_v31 = vld [vmem:[%s1768_s30 + $0x128] sm:$0xf]  ;;  %v1412_v48 = vld [vmem:[%s1768_s30 + $0x160] sm:$0xf] }
  0x25   : > { %v527_v62 = vunpack.c.l.b16 %v1390_v58  ;;  %v574_v1 = vpack.c.b16 %v566_v57, %v486_v47  ;;  %v568_v5 = vunpack.c.l.b16 %v1399_v63  ;;  %v567_v6 = vunpack.c.l.b16 %v1398_v0  ;;  %v1369_v39 = vld [vmem:[%s1768_s30 + $0x48] sm:$0xf]  ;;  %v1370_v42 = vld [vmem:[%s1768_s30 + $0x50] sm:$0xf]  ;;  %v1415_v58 = vld [vmem:[%s1768_s30 + $0x178] sm:$0xf] }
  0x26   : > { %359 = vrot.lane.b32.xlu1 %v344_v27, %s1679_s4  ;;  %355 = vrot.lane.b32.xlu0 %v342_v28, %s1679_s4  ;;  %v534_v2 = vpack.c.b16 %v526_v59, %v526_v59  ;;  %v533_v3 = vpack.c.b16 %v525_v61, %v525_v61  ;;  %v608_v4 = vshll.u32 %v573_v60, 16  ;;  %v606_v7 = vshrl.u32 %v573_v60, 16  ;;  %v1413_v51 = vld [vmem:[%s1768_s30 + $0x168] sm:$0xf]  ;;  %v1414_v61 = vld [vmem:[%s1768_s30 + $0x170] sm:$0xf] }
  0x27   : > { %465 = vrot.lane.b32.xlu2 %v435_v33, %s1681_s6  ;;  %v535_v9 = vpack.c.b16 %v527_v62, %v527_v62  ;;  %v615_v10 = vshll.u32 %v574_v1, 16  ;;  %v528_v12 = vunpack.c.l.b16 %v1391_v8  ;;  %v576_v13 = vpack.c.b16 %v568_v5, %v488_v49  ;;  %v1407_v33 = vld [vmem:[%s1768_s30 + $0x138] sm:$0xf]  ;;  %v1434_v62 = vld [vmem:[%s1768_s30 + $0x10] sm:$0xf] }
  0x28   : > { %v610_v11 = vrot.slane %v608_v4, 1  ;;  %v575_v14 = vpack.c.b16 %v567_v6, %v487_v46  ;;  %v613_v15 = vshrl.u32 %v574_v1, 16  ;;  %v1818_v27 = vunpack.c.l.b16 %v1404_v22  ;;  %v1371_v49 = vld [vmem:[%s1768_s30 + $0x58] sm:$0xf]  ;;  %v1483_v63 = vld [vmem:[%s1768_s30 + $0x10] sm:$0x10] }
  0x29   : > { %v617_v16 = vrot.slane %v615_v10, 1  ;;  %v536_v18 = vpack.c.b16 %v528_v12, %v528_v12  ;;  %v629_v19 = vshll.u32 %v576_v13, 16  ;;  %v627_v23 = vshrl.u32 %v576_v13, 16  ;;  %v1430_v1 = vld [vmem:[%s1768_s30 + $0x8] sm:$0xf] }
  0x2a   : > { %v611_v17 = vor.u32 %v610_v11, %v606_v7  ;;  %v622_v20 = vshll.u32 %v575_v14, 16  ;;  %v620_v25 = vshrl.u32 %v575_v14, 16  ;;  %v669_v32 = vpack.c.b16 %v1818_v27, %v1818_v27  ;;  %v1438_v4 = vld [vmem:[%s1768_s30 + $0x18] sm:$0xf]  ;;  %v1484_v5 = vld [vmem:[%s1768_s30 + $0x18] sm:$0x10] }
  0x2b   : > { %v618_v21 = vor.u32 %v617_v16, %v613_v15  ;;  %v631_v24 = vrot.slane %v629_v19, 1  ;;  %v1827_v34 = vunpack.c.l.b16 %v1406_v30  ;;  %v1829_v35 = vunpack.c.l.b16 %v1405_v31  ;;  %v1421_v12 = vld [vmem:[%s1768_s30 + $0x12c] sm:$0x1]  ;;  %v1420_v13 = vld [vmem:[%s1768_s30 + $0x124] sm:$0x1] }
  0x2c   : > { %v624_v26 = vrot.slane %v622_v20, 1  ;;  %v1832_v36 = vunpack.c.l.b16 %v1407_v33  ;;  %v330_v43 = vunpack.c.l.b16 %v1369_v39  ;;  %v331_v45 = vunpack.c.l.b16 %v1370_v42  ;;  %v1422_v15 = vld [vmem:[%s1768_s30 + $0x134] sm:$0x1] }
  0x2d   : > { %v632_v28 = vor.u32 %v631_v24, %v627_v23  ;;  %v671_v37 = vpack.c.b16 %v1827_v34, %v1827_v34  ;;  %v670_v38 = vpack.c.b16 %v1829_v35, %v1829_v35  ;;  %v701_v54 = vunpack.c.l.b16 %v1412_v48 }
  0x2e   : > { %471 = vrot.lane.b32.xlu1 %v456_v40, %s1681_s6  ;;  %469 = vrot.lane.b32.xlu0 %v449_v41, %s1681_s6  ;;  %v625_v29 = vor.u32 %v624_v26, %v620_v25  ;;  %v1368_v40 = vld [vmem:[%s1768_s30 + $0x40] sm:$0xf]  ;;  %v672_v41 = vpack.c.b16 %v1832_v36, %v1832_v36  ;;  %v338_v46 = vpack.c.b16 %v330_v43, %v330_v43  ;;  %v332_v55 = vunpack.c.l.b16 %v1371_v49 }
  0x2f   : > { %467 = vrot.lane.b32.xlu2 %v442_v44, %s1681_s6  ;;  %v329_v44 = vunpack.c.l.b16 %v1368_v40  ;;  %v339_v50 = vpack.c.b16 %v331_v45, %v331_v45  ;;  %v709_v59 = vpack.c.b16 %v701_v54, %v701_v54  ;;  %v704_v6 = vunpack.c.l.b16 %v1415_v58  ;;  %v1376_v54 = vld [vmem:[%s1768_s30 + $0x80] sm:$0xf] }
  0x30   : > { %v340_v60 = vpack.c.b16 %v332_v55, %v332_v55  ;;  %v1435_v8 = vor.u32 %v1483_v63, %v1434_v62  ;;  %v1439_v14 = vor.u32 %v1484_v5, %v1438_v4  ;;  %v742_v20 = vunpack.c.l.b16 %v1421_v12  ;;  %v1379_v63 = vld [vmem:[%s1768_s30 + $0x98] sm:$0xf]  ;;  %v1393_v5 = vld [vmem:[%s1768_s30 + $0x8c] sm:$0x1]  ;;  %v1386_v12 = vld [vmem:[%s1768_s30 + $0xd0] sm:$0xf] }
  0x31   : > { %v337_v47 = vpack.c.b16 %v329_v44, %v329_v44  ;;  %v712_v16 = vpack.c.b16 %v704_v6, %v704_v6  ;;  %v743_v24 = vunpack.c.l.b16 %v1422_v15  ;;  %v1392_v6 = vld [vmem:[%s1768_s30 + $0x84] sm:$0x1] }
  0x32   : > { %v425_v23 = vshll.u32 %v1439_v14, 16  ;;  %v416_v25 = vshrl.u32 %v1435_v8, 16  ;;  %v750_v30 = vpack.c.b16 %v742_v20, %v1829_v35  ;;  %v561_v15 = vunpack.c.l.b16 %v1392_v6 }
  0x34   : > { %v427_v33 = vrot.slane %v425_v23, 1 }
  0x36   : > { %509 = vrot.lane.b32.xlu1 %v495_v52, %s1680_s5  ;;  %507 = vrot.lane.b32.xlu0 %v494_v53, %s1680_s5  ;;  %v1426_v52 = vld [vmem:[%s1768_s30] sm:$0xf]  ;;  %v1481_v53 = vld [vmem:[%s1768_s30] sm:$0x10] }
  0x37   : > { %511 = vrot.lane.b32.xlu2 %v496_v56, %s1680_s5  ;;  %v702_v56 = vunpack.c.l.b16 %v1413_v51  ;;  %v1427_v57 = vor.u32 %v1481_v53, %v1426_v52 }
  0x39   : > { %v710_v0 = vpack.c.b16 %v702_v56, %v702_v56  ;;  %v402_v7 = vshrl.u32 %v1427_v57, 16  ;;  %v1377_v56 = vld [vmem:[%s1768_s30 + $0x88] sm:$0xf] }
  0x3e   : > { %547 = vrot.lane.b32.xlu1 %v534_v2, %s1682_s7  ;;  %545 = vrot.lane.b32.xlu0 %v533_v3, %s1682_s7  ;;  %v1482_v2 = vld [vmem:[%s1768_s30 + $0x8] sm:$0x10]  ;;  %v404_v3 = vshll.u32 %v1427_v57, 16 }
  0x3f   : > { %549 = vrot.lane.b32.xlu2 %v535_v9, %s1682_s7  ;;  %v703_v9 = vunpack.c.l.b16 %v1414_v61  ;;  %v1431_v10 = vor.u32 %v1482_v2, %v1430_v1  ;;  %v1384_v2 = vld [vmem:[%s1768_s30 + $0xc0] sm:$0xf] }
  0x40   : > { %v406_v11 = vrot.slane %v404_v3, 1  ;;  %v484_v3 = vunpack.c.l.b16 %v1379_v63 }
  0x41   : > { %v411_v19 = vshll.u32 %v1431_v10, 16 }
  0x42   : > { %v407_v22 = vor.u32 %v406_v11, %v402_v7  ;;  %v492_v7 = vpack.c.b16 %v484_v3, %v484_v3 }
  0x46   : > { %641 = vrot.lane.b32.xlu1 %v611_v17, %s1683_s8  ;;  %551 = vrot.lane.b32.xlu0 %v536_v18, %s1682_s7  ;;  %v418_v17 = vshll.u32 %v1435_v8, 16  ;;  %v711_v18 = vpack.c.b16 %v703_v9, %v703_v9  ;;  %v521_v8 = vunpack.c.l.b16 %v1384_v2  ;;  %v1394_v9 = vld [vmem:[%s1768_s30 + $0x94] sm:$0x1] }
  0x47   : > { %643 = vrot.lane.b32.xlu2 %v618_v21, %s1683_s8  ;;  %v741_v21 = vunpack.c.l.b16 %v1420_v13  ;;  %v1385_v13 = vld [vmem:[%s1768_s30 + $0xc8] sm:$0xf] }
  0x48   : > { %v420_v26 = vrot.slane %v418_v17, 1  ;;  %v563_v17 = vunpack.c.l.b16 %v1394_v9  ;;  %v522_v20 = vunpack.c.l.b16 %v1385_v13 }
  0x49   : > { %v749_v31 = vpack.c.b16 %v741_v21, %v1818_v27  ;;  %v248_v21 = vld [vmem:[%s1768_s30 + $0x20] sm:$0xf] }
  0x4a   : > { %v421_v39 = vor.u32 %v420_v26, %v416_v25 }
  0x4b   : > { %v784_v42 = vshll.u32 %v749_v31, 16  ;;  %v782_v35 = vshrl.u32 %v749_v31, 16 }
  0x4e   : > { %647 = vrot.lane.b32.xlu1 %v632_v28, %s1683_s8  ;;  %645 = vrot.lane.b32.xlu0 %v625_v29, %s1683_s8  ;;  %v409_v28 = vshrl.u32 %v1431_v10, 16  ;;  %v413_v29 = vrot.slane %v411_v19, 1  ;;  %v523_v19 = vunpack.c.l.b16 %v1386_v12  ;;  %v1402_v12 = vld [vmem:[%s1768_s30 + $0x110] sm:$0xf] }
  0x4f   : > { %681 = vrot.lane.b32.xlu2 %v669_v32, %s1684_s9  ;;  %v423_v32 = vshrl.u32 %v1439_v14, 16  ;;  %v562_v14 = vunpack.c.l.b16 %v1393_v5 }
  0x50   : > { %v414_v40 = vor.u32 %v413_v29, %v409_v28  ;;  %v531_v31 = vpack.c.b16 %v523_v19, %v523_v19 }
  0x51   : > { %v428_v44 = vor.u32 %v427_v33, %v423_v32  ;;  %v530_v32 = vpack.c.b16 %v522_v20, %v522_v20 }
  0x56   : > { %685 = vrot.lane.b32.xlu1 %v671_v37, %s1684_s9  ;;  %683 = vrot.lane.b32.xlu0 %v670_v38, %s1684_s9  ;;  %v1423_v37 = vld [vmem:[%s1768_s30 + $0x13c] sm:$0x1]  ;;  %v751_v38 = vpack.c.b16 %v743_v24, %v1827_v34 }
  0x57   : > { %687 = vrot.lane.b32.xlu2 %v672_v41, %s1684_s9  ;;  %v791_v41 = vshll.u32 %v750_v30, 16  ;;  %v744_v43 = vunpack.c.l.b16 %v1423_v37  ;;  %v1395_v24 = vld [vmem:[%s1768_s30 + $0x9c] sm:$0x1] }
  0x58   : > { %v798_v45 = vshll.u32 %v751_v38, 16  ;;  %v796_v34 = vshrl.u32 %v751_v38, 16 }
  0x59   : > { %v793_v27 = vrot.slane %v791_v41, 1  ;;  %v752_v48 = vpack.c.b16 %v744_v43, %v1832_v36  ;;  %v481_v36 = vunpack.c.l.b16 %v1376_v54 }
  0x5a   : > { %v800_v49 = vrot.slane %v798_v45, 1  ;;  %v249_v45 = vld [vmem:[%s1768_s30 + $0x28] sm:$0xf] }
  0x5b   : > { %v805_v53 = vshll.u32 %v752_v48, 16  ;;  %v803_v57 = vshrl.u32 %v752_v48, 16  ;;  %v489_v61 = vpack.c.b16 %v481_v36, %v481_v36  ;;  %v569_v23 = vpack.c.b16 %v561_v15, %v481_v36  ;;  %v251_v36 = vld [vmem:[%s1768_s30 + $0x38] sm:$0xf] }
  0x5c   : > { %v801_v55 = vor.u32 %v800_v49, %v796_v34 }
  0x5d   : > { %v807_v58 = vrot.slane %v805_v53, 1 }
  0x5e   : > { %347 = vrot.lane.b32.xlu1 %v338_v46, %s1679_s4  ;;  %345 = vrot.lane.b32.xlu0 %v337_v47, %s1679_s4  ;;  %v789_v46 = vshrl.u32 %v750_v30, 16  ;;  %v786_v47 = vrot.slane %v784_v42, 1 }
  0x5f   : > { %349 = vrot.lane.b32.xlu2 %v339_v50, %s1679_s4  ;;  %v808_v62 = vor.u32 %v807_v58, %v803_v57  ;;  %v1400_v57 = vld [vmem:[%s1768_s30 + $0x100] sm:$0xf] }
  0x60   : > { %v794_v51 = vor.u32 %v793_v27, %v789_v46  ;;  %v787_v52 = vor.u32 %v786_v47, %v782_v35  ;;  %v578_v27 = vshrl.u32 %v569_v23, 16 }
  0x66   : > { %721 = vrot.lane.b32.xlu1 %v709_v59, %s1685_s10  ;;  %351 = vrot.lane.b32.xlu0 %v340_v60, %s1679_s4  ;;  %v482_v59 = vunpack.c.l.b16 %v1377_v56 }
  0x67   : > { %723 = vrot.lane.b32.xlu2 %v710_v0, %s1685_s10  ;;  %v1378_v0 = vld [vmem:[%s1768_s30 + $0x90] sm:$0xf] }
  0x68   : > { %v490_v1 = vpack.c.b16 %v482_v59, %v482_v59  ;;  %v483_v4 = vunpack.c.l.b16 %v1378_v0 }
  0x6a   : > { %v491_v11 = vpack.c.b16 %v483_v4, %v483_v4  ;;  %v571_v26 = vpack.c.b16 %v563_v17, %v483_v4  ;;  %v1417_v17 = vld [vmem:[%s1768_s30 + $0x10c] sm:$0x1] }
  0x6c   : > { %v594_v42 = vshll.u32 %v571_v26, 16  ;;  %v592_v48 = vshrl.u32 %v571_v26, 16 }
  0x6e   : > { %727 = vrot.lane.b32.xlu1 %v712_v16, %s1685_s10  ;;  %725 = vrot.lane.b32.xlu0 %v711_v18, %s1685_s10  ;;  %v529_v16 = vpack.c.b16 %v521_v8, %v521_v8  ;;  %v1387_v18 = vld [vmem:[%s1768_s30 + $0xd8] sm:$0xf]  ;;  %v596_v34 = vrot.slane %v594_v42, 1 }
  0x6f   : > { %457 = vrot.lane.b32.xlu2 %v407_v22, %s1681_s6  ;;  %v570_v22 = vpack.c.b16 %v562_v14, %v482_v59  ;;  %v524_v25 = vunpack.c.l.b16 %v1387_v18  ;;  %v1401_v59 = vld [vmem:[%s1768_s30 + $0x108] sm:$0xf]  ;;  %v1408_v14 = vld [vmem:[%s1768_s30 + $0x140] sm:$0xf]  ;;  %v1416_v18 = vld [vmem:[%s1768_s30 + $0x104] sm:$0x1] }
  0x70   : > { %v597_v58 = vor.u32 %v596_v34, %v592_v48  ;;  %v697_v19 = vunpack.c.l.b16 %v1408_v14 }
  0x71   : > { %v587_v38 = vshll.u32 %v570_v22, 16  ;;  %v532_v41 = vpack.c.b16 %v524_v25, %v524_v25 }
  0x73   : > { %v589_v46 = vrot.slane %v587_v38, 1  ;;  %v1411_v38 = vld [vmem:[%s1768_s30 + $0x158] sm:$0xf] }
  0x76   : > { %461 = vrot.lane.b32.xlu1 %v421_v39, %s1681_s6  ;;  %459 = vrot.lane.b32.xlu0 %v414_v40, %s1681_s6  ;;  %v580_v39 = vshll.u32 %v569_v23, 16  ;;  %v564_v40 = vunpack.c.l.b16 %v1395_v24 }
  0x77   : > { %463 = vrot.lane.b32.xlu2 %v428_v44, %s1681_s6  ;;  %v585_v44 = vshrl.u32 %v570_v22, 16  ;;  %v1418_v22 = vld [vmem:[%s1768_s30 + $0x114] sm:$0x1] }
  0x78   : > { %v582_v35 = vrot.slane %v580_v39, 1  ;;  %v572_v47 = vpack.c.b16 %v564_v40, %v484_v3 }
  0x79   : > { %v1879_v50 = vpop.permute.xlu2 %505  ;;  %v590_v53 = vor.u32 %v589_v46, %v585_v44  ;;  %v1419_v44 = vld [vmem:[%s1768_s30 + $0x11c] sm:$0x1] }
  0x7a   : > { %v583_v54 = vor.u32 %v582_v35, %v578_v27  ;;  %v599_v63 = vshrl.u32 %v572_v47, 16 }
  0x7e   : > { %819 = vrot.lane.b32.xlu1 %v794_v51, %s1686_s11  ;;  %817 = vrot.lane.b32.xlu0 %v787_v52, %s1686_s11 }
  0x7f   : > { %821 = vrot.lane.b32.xlu2 %v801_v55, %s1686_s11  ;;  %v601_v55 = vshll.u32 %v572_v47, 16 }
  0x81   : > { %v466_v60 = vpop.permute.xlu2 %465  ;;  %v603_v0 = vrot.slane %v601_v55, 1 }
  0x86   : > { %497 = vrot.lane.b32.xlu1 %v489_v61, %s1680_s5  ;;  %823 = vrot.lane.b32.xlu0 %v808_v62, %s1686_s11  ;;  %v657_v62 = vunpack.c.l.b16 %v1400_v57 }
  0x87   : > { %499 = vrot.lane.b32.xlu2 %v490_v1, %s1680_s5  ;;  %v658_v1 = vunpack.c.l.b16 %v1401_v59 }
  0x88   : > { %v665_v9 = vpack.c.b16 %v657_v62, %v657_v62 }
  0x89   : > { %v468_v10 = vpop.permute.xlu2 %467  ;;  %v666_v13 = vpack.c.b16 %v658_v1, %v658_v1 }
  0x8e   : > { %503 = vrot.lane.b32.xlu1 %v492_v7, %s1680_s5  ;;  %501 = vrot.lane.b32.xlu0 %v491_v11, %s1680_s5  ;;  %v1403_v11 = vld [vmem:[%s1768_s30 + $0x118] sm:$0xf] }
  0x8f   : > { %537 = vrot.lane.b32.xlu2 %v529_v16, %s1682_s7  ;;  %v660_v15 = vunpack.c.l.b16 %v1403_v11  ;;  %v659_v16 = vunpack.c.l.b16 %v1402_v12  ;;  %v973_v12 = vld [vmem:[%s2172_s1 + $0x10] sm:$0x3] }
  0x90   : > { %v358_v28 = vpop.permute.xlu1 %357  ;;  %v354_v29 = vpop.permute.xlu0 %353 }
  0x91   : > { %v840_v30 = vsel %vm825_vm0, %v248_v21, %v354_v29  ;;  %v512_v33 = vpop.permute.xlu2 %511  ;;  %v668_v26 = vpack.c.b16 %v660_v15, %v660_v15  ;;  %v1410_v29 = vld [vmem:[%s1768_s30 + $0x150] sm:$0xf] }
  0x92   : > { %v860_v37 = vsel %vm850_vm1, %v840_v30, %v466_v60  ;;  %v250_v60 = vld [vmem:[%s1768_s30 + $0x30] sm:$0xf]  ;;  %v738_v30 = vunpack.c.l.b16 %v1417_v17  ;;  %v699_v39 = vunpack.c.l.b16 %v1410_v29 }
  0x93   : > { %v1907_v43 = vsel %vm867_vm2, %v860_v37, %v1879_v50  ;;  %v846_v2 = vsel %vm825_vm0, %v250_v60, %v358_v28  ;;  %v667_v28 = vpack.c.b16 %v659_v16, %v659_v16  ;;  %v739_v37 = vunpack.c.l.b16 %v1418_v22 }
  0x94   : > { %v707_v47 = vpack.c.b16 %v699_v39, %v699_v39 }
  0x95   : > { %v747_v46 = vpack.c.b16 %v739_v37, %v659_v16 }
  0x96   : > { %541 = vrot.lane.b32.xlu1 %v531_v31, %s1682_s7  ;;  %539 = vrot.lane.b32.xlu0 %v530_v32, %s1682_s7  ;;  %v737_v31 = vunpack.c.l.b16 %v1416_v18  ;;  %v1409_v32 = vld [vmem:[%s1768_s30 + $0x148] sm:$0xf] }
  0x97   : > { %543 = vrot.lane.b32.xlu2 %v532_v41, %s1682_s7  ;;  %v698_v40 = vunpack.c.l.b16 %v1409_v32  ;;  %v746_v41 = vpack.c.b16 %v738_v30, %v658_v1  ;;  %v768_v59 = vshrl.u32 %v747_v46, 16  ;;  %v1490_v18 = vld [vmem:[%s2172_s1 + $0x8] sm:$0xff]  ;;  %v247_v30 = vld [vmem:[%s1768_s30 + $0x18] sm:$0xf]  ;;  %s1491_s7 = sshll.u32 %s1669_s15, 6 }
  0x98   : > { %v360_v49 = vpop.permute.xlu1 %359  ;;  %v356_v50 = vpop.permute.xlu0 %355  ;;  %v745_v42 = vpack.c.b16 %v737_v31, %v657_v62  ;;  %s1242_s15 = scalar_lea.hbm %s2174_s3, %s1491_s7 }
  0x99   : > { %v843_v51 = vsel %vm825_vm0, %v249_v45, %v356_v50  ;;  %v1914_v52 = vpop.permute.xlu2 %549  ;;  %v849_v61 = vsel %vm825_vm0, %v251_v36, %v360_v49  ;;  %v700_v45 = vunpack.c.l.b16 %v1411_v38  ;;  %v706_v34 = vpack.c.b16 %v698_v40, %v698_v40 }
  0x9a   : > { %v862_v56 = vsel %vm850_vm1, %v843_v51, %v468_v10  ;;  %v604_v10 = vor.u32 %v603_v0, %v599_v63  ;;  %v763_v49 = vshll.u32 %v746_v41, 16  ;;  %v756_v50 = vshll.u32 %v745_v42, 16 }
  0x9b   : > { %v740_v51 = vunpack.c.l.b16 %v1419_v44  ;;  %v761_v55 = vshrl.u32 %v746_v41, 16  ;;  %v754_v36 = vshrl.u32 %v745_v42, 16  ;;  %v246_v41 = vld [vmem:[%s1768_s30 + $0x10] sm:$0xf]  ;;  %v245_v42 = vld [vmem:[%s1768_s30 + $0x8] sm:$0xf] }
  0x9c   : > { %v758_v57 = vrot.slane %v756_v50, 1 }
  0x9e   : > { %635 = vrot.lane.b32.xlu1 %v590_v53, %s1683_s8  ;;  %633 = vrot.lane.b32.xlu0 %v583_v54, %s1683_s8  ;;  %v708_v53 = vpack.c.b16 %v700_v45, %v700_v45  ;;  %v770_v54 = vshll.u32 %v747_v46, 16  ;;  %v759_v1 = vor.u32 %v758_v57, %v754_v36 }
  0x9f   : > { %637 = vrot.lane.b32.xlu2 %v597_v58, %s1683_s8  ;;  %v748_v58 = vpack.c.b16 %v740_v51, %v660_v15 }
  0xa0   : > { %v472_v3 = vpop.permute.xlu1 %471  ;;  %v470_v4 = vpop.permute.xlu0 %469  ;;  %v772_v60 = vrot.slane %v770_v54, 1 }
  0xa1   : > { %v866_v5 = vsel %vm850_vm1, %v849_v61, %v472_v3  ;;  %v864_v6 = vsel %vm850_vm1, %v846_v2, %v470_v4  ;;  %v1928_v8 = vpop.permute.xlu2 %643  ;;  %v777_v2 = vshll.u32 %v748_v58, 16  ;;  %v775_v4 = vshrl.u32 %v748_v58, 16 }
  0xa2   : > { %v1931_v7 = vsel %vm867_vm2, %v866_v5, %v512_v33  ;;  %v705_v33 = vpack.c.b16 %v697_v19, %v697_v19  ;;  %v773_v3 = vor.u32 %v772_v60, %v768_v59 }
  0xa3   : > { %v779_v5 = vrot.slane %v777_v2, 1 }
  0xa6   : > { %673 = vrot.lane.b32.xlu1 %v665_v9, %s1684_s9  ;;  %639 = vrot.lane.b32.xlu0 %v604_v10, %s1683_s8  ;;  %v780_v10 = vor.u32 %v779_v5, %v775_v4 }
  0xa7   : > { %675 = vrot.lane.b32.xlu2 %v666_v13, %s1684_s9  ;;  %v1007_v13 = vunpack.c.l.b16 %v973_v12 }
  0xa8   : > { %v510_v20 = vpop.permute.xlu1 %509  ;;  %v508_v21 = vpop.permute.xlu0 %507 }
  0xa9   : > { %v1943_v23 = vsel %vm867_vm2, %v864_v6, %v510_v20  ;;  %v1946_v24 = vsel %vm867_vm2, %v862_v56, %v508_v21  ;;  %v1948_v25 = vpop.permute.xlu2 %681  ;;  %v765_v56 = vrot.slane %v763_v49, 1  ;;  %v1010_v16 = vpack.c.b16 %v1007_v13, %v1007_v13  ;;  %v244_v20 = vld [vmem:[%s1768_s30] sm:$0xf]  ;;  %s221_s30 = sand.u32 1, %s1661_s13  }
  0xaa   : > { %v898_v58 = vsel %vm884_vm4, %v1943_v23, %v1914_v52  ;;  %s1366_s4 = sshll.u32 %s221_s30, 6  ;;  %s1228_s18 = scalar_lea.sflag [#allocation3], %s221_s30 }
  0xab   : > { %v766_v0 = vor.u32 %v765_v56, %v761_v55  ;;  %v1028_v17 = vsel %vm1026_vm3, %v1010_v16, 0  ;;  %s2094_s5 = scalar_lea.vmem [#allocation2], %s1366_s4 }
  0xac   : > { %1493 = vmatpush.bf16.msra.mxu2 %v1028_v17  ;;  %1494 = vmatpush.bf16.msra.mxu3 %v1028_v17 }
  0xad   : > { %1035 = vmatpush.bf16.msra.mxu0 %v1028_v17  ;;  %1492 = vmatpush.bf16.msra.mxu1 %v1028_v17 }
  0xae   : > { %679 = vrot.lane.b32.xlu1 %v668_v26, %s1684_s9  ;;  %677 = vrot.lane.b32.xlu0 %v667_v28, %s1684_s9  ;;  %v1489_v28 = vld [vmem:[%s2172_s1] sm:$0xff] }
  0xaf   : > { %713 = vrot.lane.b32.xlu2 %v705_v33, %s1685_s10 }
  0xb0   : > { %v1957_v27 = vpop.permute.xlu1 %547  ;;  %v1959_v35 = vpop.permute.xlu0 %545  ;;  %1496 = vmatpush.bf16.msra.mxu2 %v1490_v18  ;;  %1497 = vmatpush.bf16.msra.mxu3 %v1490_v18 }
  0xb1   : > { %v1961_v48 = vpop.permute.xlu2 %687  ;;  %1036 = vmatpush.bf16.msra.mxu0 %v1490_v18  ;;  %1495 = vmatpush.bf16.msra.mxu1 %v1490_v18  ;;  %v896_v49 = vsel %vm884_vm4, %v1946_v24, %v1957_v27 }
  0xb2   : > { %v913_v55 = vsel %vm901_vm5, %v896_v49, %v1928_v8 }
  0xb4   : > { %1499 = vmatpush.bf16.msra.mxu2 %v1489_v28  ;;  %1500 = vmatpush.bf16.msra.mxu3 %v1489_v28 }
  0xb5   : > { %1037 = vmatpush.bf16.msra.mxu0 %v1489_v28  ;;  %1498 = vmatpush.bf16.msra.mxu1 %v1489_v28 }
  0xb6   : > { %717 = vrot.lane.b32.xlu1 %v707_v47, %s1685_s10  ;;  %715 = vrot.lane.b32.xlu0 %v706_v34, %s1685_s10 }
  0xb7   : > { %719 = vrot.lane.b32.xlu2 %v708_v53, %s1685_s10  ;;  %v894_v53 = vsel %vm884_vm4, %v1907_v43, %v1959_v35  ;;  %s1243_s10 = sshll.u32 %s2094_s5, 4  ;;  %s1244_s10 = int_to_ptr.vmem [resolvable:$true] %s1243_s10 }
  0xb8   : > { %v1966_v61 = vpop.permute.xlu1 %641  ;;  %v1968_v62 = vpop.permute.xlu0 %551 }
  0xb9   : > { %v350_v63 = vpop.permute.xlu2 %349  ;;  %v911_v54 = vsel %vm901_vm5, %v894_v53, %v1966_v61 }
  0xba   : > { %v834_v45 = vsel %vm825_vm0, %v246_v41, %v350_v63  ;;  %v928_v24 = vsel %vm918_vm6, %v911_v54, %v1948_v25  ;;  %v900_v63 = vsel %vm884_vm4, %v1931_v7, %v1968_v62 }
  0xbe   : > { %811 = vrot.lane.b32.xlu1 %v766_v0, %s1686_s11  ;;  %809 = vrot.lane.b32.xlu0 %v759_v1, %s1686_s11 }
  0xbf   : > { %813 = vrot.lane.b32.xlu2 %v773_v3, %s1686_s11 }
  0xc0   : > { %v1973_v6 = vpop.permute.xlu1 %647  ;;  %v1975_v9 = vpop.permute.xlu0 %645 }
  0xc1   : > { %v724_v11 = vpop.permute.xlu2 %723  ;;  %v915_v60 = vsel %vm901_vm5, %v898_v58, %v1975_v9  ;;  %v917_v52 = vsel %vm901_vm5, %v900_v63, %v1973_v6 }
  0xc2   : > { %v934_v2 = vsel %vm918_vm6, %v917_v52, %v1961_v48  ;;  %v2076_v52 = vld [vmem:[%s2173_s2] ss:$0 sm:$0xff] }
  0xc6   : > { %815 = vrot.lane.b32.xlu0 %v780_v10, %s1686_s11  ;;  %s1245_s11 = sshll.u32 %s1242_s15, 4  ;;  %s1246_s11 = int_to_ptr.hbm [resolvable:$true] %s1245_s11 }
  0xc7   : > { %s1613_s19 = sshra.s32 %s1246_s11, 4  ;;  %s1614_s19 = int_to_ptr.hbm [resolvable:$true] %s1613_s19 }
  0xc8   : > { %v1981_v14 = vpop.permute.xlu1 %685  ;;  %v684_v15 = vpop.permute.xlu0 %683  ;;  %s1615_s21 = scalar_lea.hbm %s1614_s19, 64  ;;  %p1620_p1 = scmp.lt.s32.totalorder %s1614_s19, %s2174_s3 }
  0xc9   : > { %v458_v19 = vpop.permute.xlu2 %457  ;;  %v930_v56 = vsel %vm918_vm6, %v913_v55, %v684_v15  ;;  %v932_v0 = vsel %vm918_vm6, %v915_v60, %v1981_v14  ;;  %p1616_p12 = scmp.ne.s32.totalorder %s1614_s19, %s1615_s21  ;;  %p1621_p2 = scmp.lt.s32.totalorder %s1619_s27, %s1615_s21 }
  0xca   : > { %v947_v36 = vsel %vm935_vm7, %v930_v56, %v724_v11 }
  0xcb   : > { %p1617_p13 = pnand %p1616_p12, %p1748_p4  ;;  %p1622_p3 = por %p1621_p2, %p1620_p1 }
  0xcd   : > { %p1618_p0 = pneg %p1617_p13 }
  0xcf   : > { %p1623_p5 = pnand %p1622_p3, %p1618_p0 }
  0xd0   : > { %v348_v21 = vpop.permute.xlu1 %347  ;;  %v346_v22 = vpop.permute.xlu0 %345 }
  0xd1   : > { %v828_v26 = vsel %vm825_vm0, %v244_v20, %v346_v22  ;;  %v464_v31 = vpop.permute.xlu2 %463  ;;  %v831_v46 = vsel %vm825_vm0, %v245_v42, %v348_v21 }
  0xd2   : > { %v1992_v29 = vsel %vm850_vm1, %v828_v26, %v458_v19 }
  0xd8   : > { %v722_v32 = vpop.permute.xlu1 %721  ;;  %v352_v33 = vpop.permute.xlu0 %351 }
  0xd9   : > { %v837_v37 = vsel %vm825_vm0, %v247_v30, %v352_v33  ;;  %v822_v44 = vpop.permute.xlu2 %821  ;;  %v945_v57 = vsel %vm935_vm7, %v928_v24, %v722_v32 }
  0xda   : > { %v1997_v38 = vsel %vm850_vm1, %v837_v37, %v464_v31 }
  0xe0   : > { %v728_v39 = vpop.permute.xlu1 %727  ;;  %v726_v40 = vpop.permute.xlu0 %725 }
  0xe1   : > { %v500_v27 = vpop.permute.xlu2 %499  ;;  %v949_v23 = vsel %vm935_vm7, %v932_v0, %v726_v40  ;;  %v951_v7 = vsel %vm935_vm7, %v934_v2, %v728_v39 }
  0xe2   : > { %v966_v3 = vsel %vm952_vm8, %v949_v23, %v822_v44 }
  0xe3   : > { %v992_v10 = vunpack.c.l.b16 %v966_v3 }
  0xe8   : > { %v462_v47 = vpop.permute.xlu1 %461  ;;  %v460_v34 = vpop.permute.xlu0 %459 }
  0xe9   : > { %v2007_v50 = vsel %vm850_vm1, %v834_v45, %v462_v47  ;;  %v854_v51 = vsel %vm850_vm1, %v831_v46, %v460_v34  ;;  %v538_v4 = vpop.permute.xlu2 %537 }
  0xea   : > { %v871_v33 = vsel %vm867_vm2, %v854_v51, %v500_v27 }
  0xf0   : > { %v820_v43 = vpop.permute.xlu1 %819  ;;  %v818_v35 = vpop.permute.xlu0 %817 }
  0xf1   : > { %v964_v8 = vsel %vm952_vm8, %v947_v36, %v820_v43  ;;  %v962_v59 = vsel %vm952_vm8, %v945_v57, %v818_v35  ;;  %v544_v14 = vpop.permute.xlu2 %543 }
  0xf2   : > { %v991_v25 = vunpack.c.l.b16 %v964_v8  ;;  %v990_v61 = vunpack.c.l.b16 %v962_v59 }
  0xf4   : > { %v996_v1 = vpack.c.b16 %v991_v25, %v990_v61 }
  0xf6   : > { %1466 = vmatmul.msk.bf16.vlgmr.msra.gmra.mxu2 %vm1013_vm9, %v996_v1 }
  0xf8   : > { %v498_v62 = vpop.permute.xlu1 %497  ;;  %v824_v5 = vpop.permute.xlu0 %823 }
  0xf9   : > { %v968_v9 = vsel %vm952_vm8, %v951_v7, %v824_v5  ;;  %v638_v48 = vpop.permute.xlu2 %637  ;;  %v869_v30 = vsel %vm867_vm2, %v1992_v29, %v498_v62 }
  0xfa   : > { %v993_v11 = vunpack.c.l.b16 %v968_v9  ;;  %v886_v39 = vsel %vm884_vm4, %v869_v30, %v538_v4 }
  0xfc   : > { %v997_v6 = vpack.c.b16 %v993_v11, %v992_v10 }
  0xfe   : > { %1467 = vmatmul.msk.bf16.vlgmr.msra.gmra.mxu3 %vm1013_vm9, %v997_v6 }
 0x100   : > { %v504_v12 = vpop.permute.xlu1 %503  ;;  %v502_v13 = vpop.permute.xlu0 %501 }
 0x101   : > { %v676_v19 = vpop.permute.xlu2 %675  ;;  %v873_v45 = vsel %vm867_vm2, %v2007_v50, %v502_v13  ;;  %v875_v47 = vsel %vm867_vm2, %v1997_v38, %v504_v12 }
 0x102   : > { %v892_v27 = vsel %vm884_vm4, %v875_v47, %v544_v14 }
 0x108   : > { %v542_v15 = vpop.permute.xlu1 %541  ;;  %v540_v16 = vpop.permute.xlu0 %539 }
 0x109   : > { %v714_v22 = vpop.permute.xlu2 %713  ;;  %v888_v40 = vsel %vm884_vm4, %v871_v33, %v540_v16  ;;  %v890_v29 = vsel %vm884_vm4, %v873_v45, %v542_v15 }
 0x10a   : > { %v907_v56 = vsel %vm901_vm5, %v890_v29, %v638_v48 }
 0x110   : > { %v636_v17 = vpop.permute.xlu1 %635  ;;  %v634_v18 = vpop.permute.xlu0 %633 }
 0x111   : > { %v720_v37 = vpop.permute.xlu2 %719  ;;  %v905_v41 = vsel %vm901_vm5, %v888_v40, %v636_v17  ;;  %v903_v42 = vsel %vm901_vm5, %v886_v39, %v634_v18 }
 0x112   : > { %v922_v46 = vsel %vm918_vm6, %v905_v41, %v676_v19 }
 0x118   : > { %v674_v20 = vpop.permute.xlu1 %673  ;;  %v640_v21 = vpop.permute.xlu0 %639 }
 0x119   : > { %v920_v44 = vsel %vm918_vm6, %v903_v42, %v674_v20  ;;  %v909_v38 = vsel %vm901_vm5, %v892_v27, %v640_v21  ;;  %v814_v43 = vpop.permute.xlu2 %813 }
 0x11a   : > { %v937_v34 = vsel %vm935_vm7, %v920_v44, %v714_v22 }
 0x120   : > { %v680_v26 = vpop.permute.xlu1 %679  ;;  %v678_v28 = vpop.permute.xlu0 %677 }
 0x121   : > { %v924_v36 = vsel %vm918_vm6, %v907_v56, %v678_v28  ;;  %v926_v58 = vsel %vm918_vm6, %v909_v38, %v680_v26 }
 0x122   : > { %v943_v59 = vsel %vm935_vm7, %v926_v58, %v720_v37 }
 0x128   : > { %v718_v31 = vpop.permute.xlu1 %717  ;;  %v716_v32 = vpop.permute.xlu0 %715 }
 0x129   : > { %v939_v49 = vsel %vm935_vm7, %v922_v46, %v716_v32  ;;  %v941_v57 = vsel %vm935_vm7, %v924_v36, %v718_v31 }
 0x12a   : > { %v958_v8 = vsel %vm952_vm8, %v941_v57, %v814_v43 }
 0x12b   : > { %v988_v61 = vunpack.c.l.b16 %v958_v8 }
 0x130   : > { %v812_v51 = vpop.permute.xlu1 %811  ;;  %v810_v53 = vpop.permute.xlu0 %809 }
 0x131   : > { %v956_v54 = vsel %vm952_vm8, %v939_v49, %v812_v51  ;;  %v954_v55 = vsel %vm952_vm8, %v937_v34, %v810_v53 }
 0x132   : > { %v987_v50 = vunpack.c.l.b16 %v956_v54  ;;  %v986_v24 = vunpack.c.l.b16 %v954_v55 }
 0x134   : > { %v994_v35 = vpack.c.b16 %v987_v50, %v986_v24 }
 0x136   : > { %1464 = vmatmul.msk.bf16.vlgmr.msra.gmra.mxu0 %vm1013_vm9, %v994_v35 }
 0x138   : > { %v816_v60 = vpop.permute.xlu0 %815 }
 0x139   : > { %v960_v25 = vsel %vm952_vm8, %v943_v59, %v816_v60 }
 0x13a   : > { %v989_v63 = vunpack.c.l.b16 %v960_v25 }
 0x13c   : > { %v995_v0 = vpack.c.b16 %v989_v63, %v988_v61 }
 0x13e   : > { %1465 = vmatmul.msk.bf16.vlgmr.msra.gmra.mxu1 %vm1013_vm9, %v995_v0 }
 0x179   : > { %v1049_v23 = vpop.f32.mrf.mxu2 }
 0x17a   : > { %v1050_v1 = vadd.f32 %v2076_v52, %v1049_v23 }
 0x17c   : > { %v1472_v2 = vmul.f32 -1.442695, %v1050_v1 }
 0x17e   : > { %1567 = vpow2.f32 %v1472_v2 }
 0x181   : > { %v1051_v3 = vpop.f32.mrf.mxu2  ;;  %v1054_v4 = vpop.f32.mrf.mxu3 }
 0x182   : > { %v2080_v7 = vadd.f32 %v2076_v52, %v1051_v3  ;;  %v2083_v62 = vadd.f32 %v2076_v52, %v1054_v4 }
 0x184   : > { %v1568_v5 = vpop.eup %1567  ;;  %v1473_v9 = vmul.f32 -1.442695, %v2080_v7  ;;  %v1474_v10 = vmul.f32 -1.442695, %v2083_v62 }
 0x185   : > { %v1087_v11 = vadd.f32 1.0, %v1568_v5 }
 0x186   : > { %1569 = vpow2.f32 %v1473_v9 }
 0x187   : > { %1571 = vrcp.f32 %v1087_v11  ;;  %v1162_v20 = vand.u32 2147483648, %v1087_v11  ;;  %v1160_v22 = vand.u32 2147483647, %v1087_v11  ;;  %vm1156_vm11 = vweird.f32 %v1087_v11 }
 0x188   : > { %1573 = vpow2.f32 %v1474_v10 }
 0x189   : > { %v1056_v6 = vpop.f32.mrf.mxu3  ;;  %v1163_v31 = vor.u32 1.1754944e-38, %v1162_v20  ;;  %vm1161_vm13 = vcmp.eq.f32.partialorder %v1160_v22, 8.507059e+37 }
 0x18a   : > { %v2088_v12 = vadd.f32 %v2076_v52, %v1056_v6 }
 0x18c   : > { %v1570_v13 = vpop.eup %1569  ;;  %v1475_v14 = vmul.f32 -1.442695, %v2088_v12 }
 0x18d   : > { %v1572_v15 = vpop.eup %1571  ;;  %v1088_v16 = vadd.f32 1.0, %v1570_v13 }
 0x18e   : > { %v1574_v48 = vpop.eup %1573  ;;  %v1152_v17 = vmul.f32 %v1572_v15, %v1087_v11  ;;  %1575 = vpow2.f32 %v1475_v14  ;;  %vm1157_vm10 = vweird.f32 %v1572_v15 }
 0x18f   : > { %1577 = vrcp.f32 %v1088_v16  ;;  %v1089_v19 = vadd.f32 1.0, %v1574_v48  ;;  %vm1158_vm12 = vmor %vm1156_vm11, %vm1157_vm10  ;;  %v1177_v44 = vand.u32 2147483648, %v1088_v16  ;;  %v1175_v46 = vand.u32 2147483647, %v1088_v16 }
 0x190   : > { %v1153_v18 = vsub.f32 1.0, %v1152_v17  ;;  %vm1171_vm15 = vweird.f32 %v1088_v16 }
 0x191   : > { %1579 = vrcp.f32 %v1089_v19  ;;  %v1192_v49 = vand.u32 2147483648, %v1089_v19  ;;  %v1178_v53 = vor.u32 1.1754944e-38, %v1177_v44  ;;  %v1190_v55 = vand.u32 2147483647, %v1089_v19 }
 0x192   : > { %v1154_v21 = vmul.f32 %v1572_v15, %v1153_v18  ;;  %vm1176_vm2 = vcmp.eq.f32.partialorder %v1175_v46, 8.507059e+37  ;;  %vm1186_vm3 = vweird.f32 %v1089_v19 }
 0x193   : > { %v1193_v38 = vor.u32 1.1754944e-38, %v1192_v49  ;;  %vm1191_vm5 = vcmp.eq.f32.partialorder %v1190_v55, 8.507059e+37 }
 0x194   : > { %v1576_v26 = vpop.eup %1575  ;;  %v1155_v28 = vadd.f32 %v1572_v15, %v1154_v21 }
 0x195   : > { %v1578_v30 = vpop.eup %1577  ;;  %v1090_v32 = vadd.f32 1.0, %v1576_v26 }
 0x196   : > { %v1159_v33 = vsel %vm1158_vm12, %v1572_v15, %v1155_v28  ;;  %v1167_v37 = vmul.f32 %v1578_v30, %v1088_v16  ;;  %vm1172_vm14 = vweird.f32 %v1578_v30 }
 0x197   : > { %v1164_v39 = vsel %vm1161_vm13, %v1163_v31, %v1159_v33  ;;  %1581 = vrcp.f32 %v1090_v32  ;;  %v1580_v40 = vpop.eup %1579  ;;  %vm1173_vm0 = vmor %vm1171_vm15, %vm1172_vm14  ;;  %v1207_v35 = vand.u32 2147483648, %v1090_v32  ;;  %v1205_v59 = vand.u32 2147483647, %v1090_v32 }
 0x198   : > { %v1215_v41 = vmul.f32 %v1164_v39, %v1050_v1  ;;  %v1168_v42 = vsub.f32 1.0, %v1167_v37  ;;  %v1182_v45 = vmul.f32 %v1580_v40, %v1089_v19  ;;  %vm1187_vm1 = vweird.f32 %v1580_v40 }
 0x199   : > { %vm1188_vm4 = vmor %vm1186_vm3, %vm1187_vm1  ;;  %vm1201_vm7 = vweird.f32 %v1090_v32  ;;  %v1208_v61 = vor.u32 1.1754944e-38, %v1207_v35  ;;  %vm1206_vm10 = vcmp.eq.f32.partialorder %v1205_v59, 8.507059e+37 }
 0x19a   : > { %1223 = vst.msk [vmem:[%s2094_s5 + $0x20] sm:$0xff] %vm952_vm8, %v1215_v41  ;;  %v1169_v29 = vmul.f32 %v1578_v30, %v1168_v42  ;;  %v1183_v47 = vsub.f32 1.0, %v1182_v45 }
 0x19c   : > { %v1170_v34 = vadd.f32 %v1578_v30, %v1169_v29  ;;  %v1184_v54 = vmul.f32 %v1580_v40, %v1183_v47 }
 0x19d   : > { %v1582_v51 = vpop.eup %1581 }
 0x19e   : > { %v1174_v56 = vsel %vm1173_vm0, %v1578_v30, %v1170_v34  ;;  %v1197_v50 = vmul.f32 %v1582_v51, %v1090_v32  ;;  %v1185_v27 = vadd.f32 %v1580_v40, %v1184_v54  ;;  %vm1202_vm6 = vweird.f32 %v1582_v51 }
 0x19f   : > { %v1179_v24 = vsel %vm1176_vm2, %v1178_v53, %v1174_v56  ;;  %vm1203_vm9 = vmor %vm1201_vm7, %vm1202_vm6 }
 0x1a0   : > { %v1216_v36 = vmul.f32 %v1179_v24, %v2080_v7  ;;  %v1198_v57 = vsub.f32 1.0, %v1197_v50  ;;  %v1189_v43 = vsel %vm1188_vm4, %v1580_v40, %v1185_v27 }
 0x1a1   : > { %v1194_v58 = vsel %vm1191_vm5, %v1193_v38, %v1189_v43 }
 0x1a2   : > { %1224 = vst.msk [vmem:[%s2094_s5 + $0x28] sm:$0xff] %vm952_vm8, %v1216_v36  ;;  %v1199_v8 = vmul.f32 %v1582_v51, %v1198_v57  ;;  %v1217_v60 = vmul.f32 %v1194_v58, %v2083_v62 }
 0x1a4   : > { %v1200_v25 = vadd.f32 %v1582_v51, %v1199_v8  ;;  %1225 = vst.msk [vmem:[%s2094_s5 + $0x30] sm:$0xff] %vm952_vm8, %v1217_v60 }
 0x1a6   : > { %v1204_v63 = vsel %vm1203_vm9, %v1582_v51, %v1200_v25 }
 0x1a7   : > { %v1209_v0 = vsel %vm1206_vm10, %v1208_v61, %v1204_v63 }
 0x1a8   : > { %v1218_v23 = vmul.f32 %v1209_v0, %v2088_v12 }
 0x1aa   : > { %1226 = vst.msk [vmem:[%s2094_s5 + $0x38] sm:$0xff] %vm952_vm8, %v1218_v23 }
 0x1b3   : > { %v1039_v1 = vpop.f32.mrf.mxu0 }
 0x1b4   : > { %v1040_v2 = vadd.f32 %v2076_v52, %v1039_v1 }
 0x1b6   : > { %v1468_v3 = vmul.f32 -1.442695, %v1040_v2 }
 0x1b8   : > { %1583 = vpow2.f32 %v1468_v3 }
 0x1bb   : > { %v1041_v4 = vpop.f32.mrf.mxu0  ;;  %v1044_v7 = vpop.f32.mrf.mxu1 }
 0x1bc   : > { %v2109_v62 = vadd.f32 %v2076_v52, %v1041_v4  ;;  %v2112_v5 = vadd.f32 %v2076_v52, %v1044_v7 }
 0x1be   : > { %v1584_v9 = vpop.eup %1583  ;;  %v1469_v10 = vmul.f32 -1.442695, %v2109_v62  ;;  %v1470_v11 = vmul.f32 -1.442695, %v2112_v5 }
 0x1bf   : > { %v1083_v6 = vadd.f32 1.0, %v1584_v9 }
 0x1c0   : > { %1585 = vpow2.f32 %v1469_v10 }
 0x1c1   : > { %1587 = vrcp.f32 %v1083_v6  ;;  %v1102_v21 = vand.u32 2147483648, %v1083_v6  ;;  %v1100_v26 = vand.u32 2147483647, %v1083_v6  ;;  %vm1096_vm12 = vweird.f32 %v1083_v6 }
 0x1c2   : > { %1589 = vpow2.f32 %v1470_v11 }
 0x1c3   : > { %v1046_v12 = vpop.f32.mrf.mxu1  ;;  %v1103_v31 = vor.u32 1.1754944e-38, %v1102_v21  ;;  %vm1101_vm14 = vcmp.eq.f32.partialorder %v1100_v26, 8.507059e+37 }
 0x1c4   : > { %v2117_v13 = vadd.f32 %v2076_v52, %v1046_v12 }
 0x1c6   : > { %v1586_v14 = vpop.eup %1585  ;;  %v1471_v15 = vmul.f32 -1.442695, %v2117_v13 }
 0x1c7   : > { %v1588_v16 = vpop.eup %1587  ;;  %v1084_v48 = vadd.f32 1.0, %v1586_v14 }
 0x1c8   : > { %v1590_v17 = vpop.eup %1589  ;;  %v1092_v18 = vmul.f32 %v1588_v16, %v1083_v6  ;;  %1591 = vpow2.f32 %v1471_v15  ;;  %vm1097_vm11 = vweird.f32 %v1588_v16 }
 0x1c9   : > { %1593 = vrcp.f32 %v1084_v48  ;;  %v1085_v20 = vadd.f32 1.0, %v1590_v17  ;;  %vm1098_vm13 = vmor %vm1096_vm12, %vm1097_vm11  ;;  %v1117_v44 = vand.u32 2147483648, %v1084_v48  ;;  %v1115_v46 = vand.u32 2147483647, %v1084_v48 }
 0x1ca   : > { %v1093_v19 = vsub.f32 1.0, %v1092_v18  ;;  %vm1111_vm0 = vweird.f32 %v1084_v48 }
 0x1cb   : > { %1595 = vrcp.f32 %v1085_v20  ;;  %v1132_v49 = vand.u32 2147483648, %v1085_v20  ;;  %v1118_v53 = vor.u32 1.1754944e-38, %v1117_v44  ;;  %v1130_v55 = vand.u32 2147483647, %v1085_v20 }
 0x1cc   : > { %v1094_v22 = vmul.f32 %v1588_v16, %v1093_v19  ;;  %vm1116_vm3 = vcmp.eq.f32.partialorder %v1115_v46, 8.507059e+37  ;;  %vm1126_vm4 = vweird.f32 %v1085_v20 }
 0x1cd   : > { %v1133_v38 = vor.u32 1.1754944e-38, %v1132_v49  ;;  %vm1131_vm6 = vcmp.eq.f32.partialorder %v1130_v55, 8.507059e+37 }
 0x1ce   : > { %v1592_v28 = vpop.eup %1591  ;;  %v1095_v30 = vadd.f32 %v1588_v16, %v1094_v22 }
 0x1cf   : > { %v1594_v52 = vpop.eup %1593  ;;  %v1086_v32 = vadd.f32 1.0, %v1592_v28 }
 0x1d0   : > { %v1099_v33 = vsel %vm1098_vm13, %v1588_v16, %v1095_v30  ;;  %v1107_v37 = vmul.f32 %v1594_v52, %v1084_v48  ;;  %vm1112_vm15 = vweird.f32 %v1594_v52 }
 0x1d1   : > { %v1104_v39 = vsel %vm1101_vm14, %v1103_v31, %v1099_v33  ;;  %1597 = vrcp.f32 %v1086_v32  ;;  %v1596_v40 = vpop.eup %1595  ;;  %vm1113_vm1 = vmor %vm1111_vm0, %vm1112_vm15  ;;  %v1147_v35 = vand.u32 2147483648, %v1086_v32  ;;  %v1145_v59 = vand.u32 2147483647, %v1086_v32 }
 0x1d2   : > { %v1211_v41 = vmul.f32 %v1104_v39, %v1040_v2  ;;  %v1108_v42 = vsub.f32 1.0, %v1107_v37  ;;  %v1122_v45 = vmul.f32 %v1596_v40, %v1085_v20  ;;  %vm1127_vm2 = vweird.f32 %v1596_v40 }
 0x1d3   : > { %vm1128_vm5 = vmor %vm1126_vm4, %vm1127_vm2  ;;  %vm1141_vm9 = vweird.f32 %v1086_v32  ;;  %v1148_v61 = vor.u32 1.1754944e-38, %v1147_v35  ;;  %vm1146_vm11 = vcmp.eq.f32.partialorder %v1145_v59, 8.507059e+37 }
 0x1d4   : > { %1219 = vst.msk [vmem:[%s2094_s5] sm:$0xff] %vm952_vm8, %v1211_v41  ;;  %v1109_v29 = vmul.f32 %v1594_v52, %v1108_v42  ;;  %v1123_v47 = vsub.f32 1.0, %v1122_v45 }
 0x1d6   : > { %v1110_v34 = vadd.f32 %v1594_v52, %v1109_v29  ;;  %v1124_v54 = vmul.f32 %v1596_v40, %v1123_v47 }
 0x1d7   : > { %v1598_v51 = vpop.eup %1597 }
 0x1d8   : > { %v1114_v56 = vsel %vm1113_vm1, %v1594_v52, %v1110_v34  ;;  %v1137_v50 = vmul.f32 %v1598_v51, %v1086_v32  ;;  %v1125_v27 = vadd.f32 %v1596_v40, %v1124_v54  ;;  %vm1142_vm7 = vweird.f32 %v1598_v51 }
 0x1d9   : > { %v1119_v24 = vsel %vm1116_vm3, %v1118_v53, %v1114_v56  ;;  %vm1143_vm10 = vmor %vm1141_vm9, %vm1142_vm7 }
 0x1da   : > { %v1212_v36 = vmul.f32 %v1119_v24, %v2109_v62  ;;  %v1138_v57 = vsub.f32 1.0, %v1137_v50  ;;  %v1129_v43 = vsel %vm1128_vm5, %v1596_v40, %v1125_v27 }
 0x1db   : > { %v1134_v58 = vsel %vm1131_vm6, %v1133_v38, %v1129_v43 }
 0x1dc   : > { %1220 = vst.msk [vmem:[%s2094_s5 + $0x8] sm:$0xff] %vm952_vm8, %v1212_v36  ;;  %v1139_v8 = vmul.f32 %v1598_v51, %v1138_v57  ;;  %v1213_v60 = vmul.f32 %v1134_v58, %v2112_v5 }
 0x1de   : > { %v1140_v25 = vadd.f32 %v1598_v51, %v1139_v8  ;;  %1221 = vst.msk [vmem:[%s2094_s5 + $0x10] sm:$0xff] %vm952_vm8, %v1213_v60 }
 0x1e0   : > { %v1144_v63 = vsel %vm1143_vm10, %v1598_v51, %v1140_v25 }
 0x1e1   : > { %v1149_v0 = vsel %vm1146_vm11, %v1148_v61, %v1144_v63 }
 0x1e2   : > { %v1214_v23 = vmul.f32 %v1149_v0, %v2117_v13 }
 0x1e4   : > { %1222 = vst.msk [vmem:[%s2094_s5 + $0x18] sm:$0xff] %vm952_vm8, %v1214_v23 }
 0x1e5   : > { %1626 = shalt.err (!%p1623_p5)
}
 0x1e6   : > { %s1687_s30 = smov 128  }
 0x1e7   : > { %1502 = dma.vmem_to_hbm [thread:$0]  (%p1748_p4), %s1244_s10, 1024, %s1246_s11, %s1228_s18, %s1687_s30, %s1687_s30, %s1681_s6  }
 0x1e8 PF: > { %p1508_p6 = scmp.ge.s32.totalorder %s1677_s17, 2  ;;  %s1260_s4 = sand.u32 1, %s1657_s12  }
 0x1e9   : > { %s1261_s5 = scalar_lea.sflag [#allocation3], %s1260_s4 }
 0x1ea   : > { %p1505_p7 = pnand %p1508_p6, %p1755_p8 }
 0x1ec   : > { %p1506_p9 = pneg %p1505_p7 }
 0x1ee   : > { %1652 = dma.done.wait (%p1506_p9), %s1261_s5, 1024  }
 0x1ef   : > { %1654 = vsyncadd (%p1506_p9), %s1261_s5, 4294966272  ;;  %s16_s17 = sadd.s32 1, %s1677_s17   ;;  %s2177_s12 = smov %s1661_s13 }
 0x1f0   : > { %p13_p10 = scmp.ge.s32.totalorder %s16_s17, 4   ;;  %s2178_s13 = smov %s1665_s14 }
 0x1f1   : > { %s2179_s14 = smov %s1761_s25  ;;  %s2180_s15 = smov %s1673_s16 }
 0x1f2   : > { %s2181_s16 = smov %s2183_s20  ;;  %15 = sbr.rel (!%p13_p10) target bundleno = 4 (0x4), region = 78 }
 0x1f7   :  { %1267 = vsyncpa [#allocation3], 1 }
 0x1f8   :  { %1269 = vsyncpa [#allocation3 + $0x1], 1 }

</bundles_post_ra>
